<compile_context>
chip_gen: v7x
topology: tpu7x:2x2x1
jax: 0.10.0
libtpu: 0.0.40
codegen_flags: <defaults>
</compile_context>

<pallas_src>
import jax
import jax.numpy as jnp
from jax.experimental import pallas as pl
from jax.experimental.pallas import tpu as pltpu

_LANES = 128
_MAX_TILE_ROWS = 1024  # 1024 x 128 x 4 B = 512 KiB per stream per block


# ---------------------------------------------------------------------------
# Pallas kernel: elementwise hot path (compare-replace + convex blend)
# ---------------------------------------------------------------------------
def _masking_kernel(feat_ref, sel_ref, samp_ref, out_ref):
    # Cast in-kernel (avoids separate un-fused XLA astype passes over HBM).
    # Equality is evaluated in f32 on both sides, consistently.
    f = feat_ref[...].astype(jnp.float32)
    s = sel_ref[...].astype(jnp.float32)
    m = samp_ref[...].astype(jnp.float32)
    # sampled_mask[features == sampled_mask] = -1
    m = jnp.where(f == m, -1.0, m)
    # result = features * selection + (1 - selection) * sampled_mask
    out_ref[...] = f * s + (1.0 - s) * m


def _fold_lane_dense(x, rows):
    """Flatten x and fold into a lane-dense [rows, 128] slab (zero-padded tail)."""
    flat = x.reshape(-1)
    pad = rows * _LANES - flat.size
    if pad:
        flat = jnp.pad(flat, (0, pad))
    return flat.reshape(rows, _LANES)


def masking_pallas(features, selection, sampled_mask):
    """Compare-replace + blend as a tiled, lane-dense Pallas kernel."""
    B, D = features.shape
    assert selection.shape == (B, D) and sampled_mask.shape == (B, D)
    n = B * D

    # Lane-dense layout: the op is purely elementwise and all tensors share a shape,
    # so the [B, D] -> [rows, 128] fold is pure layout plumbing.
    rows_min = pl.cdiv(n, _LANES)
    tile_rows = rows_min if rows_min <= _MAX_TILE_ROWS else _MAX_TILE_ROWS
    rows = pl.cdiv(rows_min, tile_rows) * tile_rows  # exact grid division, no OOB blocks

    f2 = _fold_lane_dense(features, rows)
    s2 = _fold_lane_dense(selection, rows)
    m2 = _fold_lane_dense(sampled_mask, rows)

    grid = (rows // tile_rows,)
    spec = pl.BlockSpec((tile_rows, _LANES), lambda i: (i, 0))

    out = pl.pallas_call(
        _masking_kernel,
        out_shape=jax.ShapeDtypeStruct((rows, _LANES), jnp.float32),
        grid=grid,
        in_specs=[spec, spec, spec],
        out_specs=spec,
        compiler_params=pltpu.CompilerParams(
            dimension_semantics=("parallel",),  # shard row-blocks across TCs on v7x
        ),
        cost_estimate=pl.CostEstimate(
            flops=3 * rows * _LANES,
            transcendentals=0,
            bytes_accessed=4 * rows * _LANES * 4,
        ),
    )(f2, s2, m2)

    return out.reshape(-1)[:n].reshape(B, D)


# ---------------------------------------------------------------------------
# Glue: sample the mask values (np.random.choice equivalent) in plain JAX
# ---------------------------------------------------------------------------
# TODO(synk): for D dividing 128, sampling could be fused into the kernel via
# pltpu.prng_random_bits + a per-lane candidate table to drop one HBM stream.
def sample_mask(key, values_table, counts, batch):
    """values_table: [D, Vmax] padded candidate values; counts: [D] valid counts.

    Returns sampled_mask [B, D] where sampled_mask[b, d] is a uniformly random
    element of masking_values[d] (mirrors np.random.choice per feature)."""
    D, _ = values_table.shape
    idx = jax.random.randint(key, (batch, D), minval=0, maxval=counts[None, :])
    # gather: sampled[b, d] = values_table[d, idx[b, d]]
    return values_table[jnp.arange(D)[None, :], idx]


def masking_forward(key, features, selection, values_table, counts):
    B, D = features.shape
    assert selection.shape == (B, D)
    assert values_table.shape[0] == D
    sampled_mask = sample_mask(key, values_table, counts, B)
    return masking_pallas(features, selection, sampled_mask)


# ---------------------------------------------------------------------------
# Pure-JAX reference for correctness checking
# ---------------------------------------------------------------------------
def masking_ref(features, selection, sampled_mask):
    f = features.astype(jnp.float32)
    s = selection.astype(jnp.float32)
    m = sampled_mask.astype(jnp.float32)
    m = jnp.where(f == m, -1.0, m)
    return (f * s + (1.0 - s) * m).astype(jnp.float32)


if __name__ == "__main__":
    B, D, Vmax = 8, 16, 4

    key = jax.random.PRNGKey(0)
    k_feat, k_sel, k_mask = jax.random.split(key, 3)

    # Deterministic "masking_values": feature d has candidate values
    # {d, d + 0.5, d + 1.0, d + 1.5} (Vmax = 4 values per feature).
    values_table = (
        jnp.arange(D, dtype=jnp.float32)[:, None]
        + 0.5 * jnp.arange(Vmax, dtype=jnp.float32)[None, :]
    )  # [D, Vmax]
    counts = jnp.full((D,), Vmax, dtype=jnp.int32)

    # Features drawn from the same candidate grid so the `== -> -1` branch is hit.
    features = (
        jnp.arange(D, dtype=jnp.float32)[None, :]
        + 0.5 * (jax.random.randint(k_feat, (B, D), 0, Vmax)).astype(jnp.float32)
    )
    # Selection vector in {0, 1} like a sampled selection probability mask.
    selection = jax.random.bernoulli(k_sel, 0.5, (B, D)).astype(jnp.float32)

    # Sampling in glue so kernel & reference see the same mask.
    sampled_mask = sample_mask(k_mask, values_table, counts, B)

    out = masking_pallas(features, selection, sampled_mask)
    out = jax.block_until_ready(out)

    ref = masking_ref(features, selection, sampled_mask)
    assert out.shape == (B, D) and out.dtype == jnp.float32
    assert jnp.allclose(out, ref, atol=1e-6), "mismatch vs reference"

    # Also exercise a larger, non-aligned shape to cover the tiled/padded path.
    B2, D2 = 37, 300
    k_f2, k_s2, k_m2 = jax.random.split(jax.random.PRNGKey(1), 3)
    f_big = jax.random.normal(k_f2, (B2, D2), dtype=jnp.float32)
    s_big = jax.random.bernoulli(k_s2, 0.5, (B2, D2)).astype(jnp.float32)
    m_big = jax.random.normal(k_m2, (B2, D2), dtype=jnp.float32)
    out_big = jax.block_until_ready(masking_pallas(f_big, s_big, m_big))
    assert jnp.allclose(out_big, masking_ref(f_big, s_big, m_big), atol=1e-6)

    print("KERNEL_OK")
</pallas_src>

<mosaic_0001>
module attributes {stable_mosaic.version = 11 : i64} {
  func.func @_masking_kernel(%arg0: i32, %arg1: memref<1x128xf32, #tpu.memory_space<vmem>>, %arg2: memref<1x128xf32, #tpu.memory_space<vmem>>, %arg3: memref<1x128xf32, #tpu.memory_space<vmem>>, %arg4: memref<1x128xf32, #tpu.memory_space<vmem>>) attributes {dimension_semantics = [#tpu.dimension_semantics<parallel>], iteration_bounds = array<i64: 1>, scalar_prefetch = 0 : i64, scratch_operands = 0 : i64, tpu.core_type = #tpu.core_type<tc>, window_params = [{transform_indices = @transform_0, window_bounds = array<i64: 1, 128>}, {transform_indices = @transform_1, window_bounds = array<i64: 1, 128>}, {transform_indices = @transform_2, window_bounds = array<i64: 1, 128>}, {transform_indices = @transform_3, window_bounds = array<i64: 1, 128>}]} {
    %c0 = arith.constant 0 : index
    %c0_0 = arith.constant 0 : index
    %0 = vector.load %arg1[%c0, %c0_0] : memref<1x128xf32, #tpu.memory_space<vmem>>, vector<1x128xf32>
    %c0_1 = arith.constant 0 : index
    %c0_2 = arith.constant 0 : index
    %1 = vector.load %arg2[%c0_1, %c0_2] : memref<1x128xf32, #tpu.memory_space<vmem>>, vector<1x128xf32>
    %c0_3 = arith.constant 0 : index
    %c0_4 = arith.constant 0 : index
    %2 = vector.load %arg3[%c0_3, %c0_4] : memref<1x128xf32, #tpu.memory_space<vmem>>, vector<1x128xf32>
    %3 = arith.cmpf oeq, %0, %2 : vector<1x128xf32>
    %cst = arith.constant -1.000000e+00 : f32
    %4 = vector.broadcast %cst : f32 to vector<1x128xf32>
    %5 = arith.select %3, %4, %2 : vector<1x128xi1>, vector<1x128xf32>
    %6 = arith.mulf %0, %1 : vector<1x128xf32>
    %cst_5 = arith.constant 1.000000e+00 : f32
    %7 = vector.broadcast %cst_5 : f32 to vector<1x128xf32>
    %8 = arith.subf %7, %1 : vector<1x128xf32>
    %9 = arith.mulf %8, %5 : vector<1x128xf32>
    %10 = arith.addf %6, %9 : vector<1x128xf32>
    %c0_6 = arith.constant 0 : index
    %c0_7 = arith.constant 0 : index
    %11 = vector.load %arg4[%c0_6, %c0_7] : memref<1x128xf32, #tpu.memory_space<vmem>>, vector<1x128xf32>
    tpu.vector_store %arg4[%c0_6, %c0_7], %10 {strides = array<i32>} : memref<1x128xf32, #tpu.memory_space<vmem>>, vector<1x128xf32>,
    return
  }
  func.func @transform_0(%arg0: i32) -> (i32, i32) {
    %c0_i32 = arith.constant 0 : i32
    %c0_i32_0 = arith.constant 0 : i32
    return %arg0, %c0_i32 : i32, i32
  }
  func.func @transform_1(%arg0: i32) -> (i32, i32) {
    %c0_i32 = arith.constant 0 : i32
    %c0_i32_0 = arith.constant 0 : i32
    return %arg0, %c0_i32 : i32, i32
  }
  func.func @transform_2(%arg0: i32) -> (i32, i32) {
    %c0_i32 = arith.constant 0 : i32
    %c0_i32_0 = arith.constant 0 : i32
    return %arg0, %c0_i32 : i32, i32
  }
  func.func @transform_3(%arg0: i32) -> (i32, i32) {
    %c0_i32 = arith.constant 0 : i32
    %c0_i32_0 = arith.constant 0 : i32
    return %arg0, %c0_i32 : i32, i32
  }
}

</mosaic_0001>

<bundles_post_ra>
// kernel: tpu_custom_call.1
= control target key start
LH: loop header
LB: loop body
LE: loop exit
PB: predicated region body
PF: predicated region fallthrough
CT: control target
= control target key end

     0   :  { %8 = vsyncpa [#allocation3], 0  ;;  %s154_s0 = inlined_call_operand.hbm [shape: f32[1,128], index: 0, kind: input, shape index: {}]   ;;  %s155_s1 = inlined_call_operand.vmem [shape: f32[1,128], index: 1, kind: input, shape index: {}]   ;;  %s156_s2 = inlined_call_operand.vmem [shape: f32[1,128], index: 2, kind: input, shape index: {}]   ;;  %s157_s3 = inlined_call_operand.hbm [shape: f32[1,128], index: 3, kind: output, shape index: {}]  }
   0x1   :  { %9 = vsyncpa [#allocation4], 0  ;;  %s102_s12 = smov [#allocation2]   ;;  %s54_s16 = scalar_lea.hbm %s154_s0, 16 }
   0x2   :  { %s16_s13 = sshll.u32 %s102_s12, 4  ;;  %p55_p0 = scmp.ne.s32.totalorder %s154_s0, %s54_s16  ;;  %s17_s13 = int_to_ptr.vmem [resolvable:$true] %s16_s13 }
   0x3   :  { %p58_p1 = scmp.lt.u32.totalorder %s54_s16, %s154_s0 }
   0x5   :  { %p60_p2 = pnand %p58_p1, %p55_p0 }
   0x7   :  { %63 = shalt.err (!%p60_p2)
}
   0x8   :  { %s64_s21 = scalar_lea.vmem %s17_s13, 16  ;;  %s68_s22 = scalar_lea.vmem %s17_s13, 32 }
   0x9   :  { %p65_p3 = scmp.ne.s32.totalorder %s17_s13, %s64_s21  ;;  %p69_p4 = scmp.lt.s32.totalorder %s17_s13, %s17_s13 }
   0xa   :  { %p70_p5 = scmp.lt.s32.totalorder %s68_s22, %s64_s21 }
   0xc   :  { %p71_p6 = por %p70_p5, %p69_p4 }
   0xe   :  { %p72_p7 = pnand %p71_p6, %p65_p3 }
  0x10   :  { %75 = shalt.err (!%p72_p7)
}
  0x11   :  { %19 = dma.hbm_to_vmem [thread:$0]  %s154_s0, 16, %s17_s13, [#allocation3]  }
  0x12   :  { %98 = dma.done.wait [#allocation3], 16  }
  0x13   :  { %99 = vsyncadd [#allocation3], 4294967280  ;;  %v27_v0 = vld [vmem:[#allocation2] sm:$0x1]  ;;  %s103_s29 = smov [#allocation5]  }
  0x14   :  { %v28_v1 = vld [vmem:[%s155_s1] sm:$0x1]  ;;  %s43_s30 = sshll.u32 %s103_s29, 4  ;;  %s44_s30 = int_to_ptr.vmem [resolvable:$true] %s43_s30 }
  0x15   :  { %v29_v2 = vld [vmem:[%s156_s2] sm:$0x1]  ;;  %v32_v3 = vmul.f32 %v28_v1, %v27_v0  ;;  %v33_v4 = vsub.f32 1.0, %v28_v1  ;;  %s76_s0 = scalar_lea.vmem %s44_s30, 16  ;;  %s80_s4 = scalar_lea.vmem %s44_s30, 32 }
  0x16   :  { %vm30_vm0 = vcmp.eq.f32.partialorder %v27_v0, %v29_v2  ;;  %p77_p8 = scmp.ne.s32.totalorder %s44_s30, %s76_s0  ;;  %p81_p9 = scmp.lt.s32.totalorder %s44_s30, %s44_s30 }
  0x17   :  { %v31_v5 = vsel %vm30_vm0, -1.0, %v29_v2  ;;  %p82_p10 = scmp.lt.s32.totalorder %s80_s4, %s76_s0 }
  0x18   :  { %v34_v6 = vmul.f32 %v33_v4, %v31_v5 }
  0x19   :  { %p83_p11 = por %p82_p10, %p81_p9 }
  0x1a   :  { %v35_v7 = vadd.f32 %v34_v6, %v32_v3 }
  0x1b   :  { %p84_p12 = pnand %p83_p11, %p77_p8 }
  0x1c   :  { %36 = vst [vmem:[#allocation5] sm:$0x1] %v35_v7 }
  0x1d   :  { %87 = shalt.err (!%p84_p12)
}
  0x1e   :  { %s88_s5 = scalar_lea.hbm %s157_s3, 16 }
  0x1f   :  { %p89_p13 = scmp.ne.s32.totalorder %s157_s3, %s88_s5  ;;  %p92_p0 = scmp.lt.u32.totalorder %s88_s5, %s157_s3 }
  0x21   :  { %p94_p1 = pnand %p92_p0, %p89_p13 }
  0x23   :  { %97 = shalt.err (!%p94_p1)
}
  0x24   :  { %46 = dma.vmem_to_hbm [thread:$0]  %s44_s30, 16, %s157_s3, [#allocation4]  }
  0x25   :  { %100 = dma.done.wait [#allocation4], 16  }
  0x26   :  { %101 = vsyncadd [#allocation4], 4294967280 }
  0x27   :  { %50 = vsyncpa [#allocation3], 1 }
  0x28   :  { %51 = vsyncpa [#allocation4], 1 }

</bundles_post_ra>
